<compile_context>
chip_gen: v5e
topology: v5e:2x2
jax: 0.10.0
libtpu: 0.0.40
codegen_flags: <defaults>
</compile_context>

<pallas_src>
import functools
import math

import jax
import jax.numpy as jnp
from jax import lax
from jax.experimental import pallas as pl
from jax.experimental.pallas import tpu as pltpu


def _sigmoid(x):
    # sigmoid(x) == 0.5 * (tanh(x/2) + 1): one EUP op instead of exp + divide.
    return 0.5 * jnp.tanh(0.5 * x) + 0.5


# ----------------------------------------------------------------------------
# Phase 1: input projection for all timesteps (parallel over time chunks).
# ----------------------------------------------------------------------------
def input_proj_kernel(x_ref, w_ref, b_ref, out_ref):
    # x_ref: (rows_block, I) bf16, w_ref: (I, 4H) bf16, b_ref: (1, 4H) f32
    out_ref[...] = (
        jnp.dot(x_ref[...], w_ref[...], preferred_element_type=jnp.float32)
        + b_ref[...]
    )


# ----------------------------------------------------------------------------
# Phase 2: sequential recurrence over time, chunked.
# ----------------------------------------------------------------------------
def lstm_recurrence_kernel(xg_ref, w_hh_ref, h0_ref, c0_ref,
                           h_out_ref, c_out_ref, h_sc, c_sc,
                           *, hidden_size, chunk, seq_len):
    ci = pl.program_id(1)          # time-chunk index (serial axis)

    # Load initial hidden / cell state into resident VMEM scratch at chunk 0.
    @pl.when(ci == 0)
    def _():
        h_sc[...] = h0_ref[...]
        c_sc[...] = c0_ref[...]

    H = hidden_size
    w_hh = w_hh_ref[...]           # (H, 4H) bf16 -- hoisted out of the loop
    t_base = ci * chunk

    def step(s, carry):
        h, c = carry               # f32 (B_blk, H)
        # Recurrent half only: input projection + bias is precomputed in xg.
        gates = xg_ref[s] + jnp.dot(h.astype(w_hh.dtype), w_hh,
                                    preferred_element_type=jnp.float32)
        i_g = _sigmoid(gates[:, 0 * H:1 * H])
        f_g = _sigmoid(gates[:, 1 * H:2 * H])
        g_g = jnp.tanh(gates[:, 2 * H:3 * H])
        o_g = _sigmoid(gates[:, 3 * H:4 * H])
        c_new = f_g * c + i_g * g_g
        h_new = o_g * jnp.tanh(c_new)
        # Mask padded tail steps (time padded up to a multiple of `chunk`).
        valid = (t_base + s) < seq_len
        h = jnp.where(valid, h_new, h)
        c = jnp.where(valid, c_new, c)
        return h, c

    unroll = True if chunk <= 32 else 8
    h, c = lax.fori_loop(0, chunk, step, (h_sc[...], c_sc[...]), unroll=unroll)
    h_sc[...] = h
    c_sc[...] = c

    # Emit final (h, c) after the last time chunk (output block index is
    # constant across the serial axis, so writeback is deferred to the end).
    @pl.when(ci == pl.num_programs(1) - 1)
    def _():
        h_out_ref[...] = h
        c_out_ref[...] = c


def lstm_forward(x, w_ih, w_hh, b_ih, b_hh, h0, c0, *,
                 chunk=128, batch_block=None, mxu_dtype=jnp.bfloat16):
    """x: (T, B, I); w_ih: (4H, I); w_hh: (4H, H); b_*: (4H,); h0/c0: (B, H)."""
    T, B, I = x.shape
    H = h0.shape[-1]
    G = 4 * H

    if batch_block is None:
        batch_block = B            # set to B//2 (8-aligned) to use both v7x TCs
    assert B % batch_block == 0
    nb = B // batch_block

    chunk = max(1, min(chunk, T))
    n_chunks = pl.cdiv(T, chunk)
    T_pad = n_chunks * chunk

    # ---- Phase 1: xg[t] = x[t] @ w_ih^T + (b_ih + b_hh), all t at once ------
    w_ih_t = jnp.transpose(w_ih).astype(mxu_dtype)            # (I, 4H)
    bias = (b_ih + b_hh).astype(jnp.float32).reshape(1, G)    # (1, 4H)

    x_pad = x
    if T_pad != T:
        x_pad = jnp.concatenate(
            [x, jnp.zeros((T_pad - T, B, I), x.dtype)], axis=0)
    x2d = x_pad.reshape(T_pad * B, I).astype(mxu_dtype)
    rows_block = chunk * B

    xg2d = pl.pallas_call(
        input_proj_kernel,
        out_shape=jax.ShapeDtypeStruct((T_pad * B, G), jnp.float32),
        grid=(n_chunks,),
        in_specs=[
            pl.BlockSpec((rows_block, I), lambda i: (i, 0)),
            pl.BlockSpec((I, G), lambda i: (0, 0)),
            pl.BlockSpec((1, G), lambda i: (0, 0)),
        ],
        out_specs=pl.BlockSpec((rows_block, G), lambda i: (i, 0)),
        compiler_params=pltpu.CompilerParams(
            dimension_semantics=("parallel",)),
    )(x2d, w_ih_t, bias)
    xg = xg2d.reshape(T_pad, B, G)

    # ---- Phase 2: sequential recurrence -------------------------------------
    w_hh_t = jnp.transpose(w_hh).astype(mxu_dtype)             # (H, 4H)
    kernel = functools.partial(
        lstm_recurrence_kernel, hidden_size=H, chunk=chunk, seq_len=T)

    h_out, c_out = pl.pallas_call(
        kernel,
        out_shape=(
            jax.ShapeDtypeStruct((B, H), jnp.float32),
            jax.ShapeDtypeStruct((B, H), jnp.float32),
        ),
        grid=(nb, n_chunks),
        in_specs=[
            pl.BlockSpec((chunk, batch_block, G), lambda b, t: (t, b, 0)),  # xg chunk
            pl.BlockSpec((H, G), lambda b, t: (0, 0)),                      # w_hh^T (resident)
            pl.BlockSpec((batch_block, H), lambda b, t: (b, 0)),            # h0
            pl.BlockSpec((batch_block, H), lambda b, t: (b, 0)),            # c0
        ],
        out_specs=(
            pl.BlockSpec((batch_block, H), lambda b, t: (b, 0)),            # final h
            pl.BlockSpec((batch_block, H), lambda b, t: (b, 0)),            # final c
        ),
        scratch_shapes=[
            pltpu.VMEM((batch_block, H), jnp.float32),                      # running h
            pltpu.VMEM((batch_block, H), jnp.float32),                      # running c
        ],
        compiler_params=pltpu.CompilerParams(
            dimension_semantics=("parallel", "arbitrary")),                 # batch ||, time serial
    )(xg, w_hh_t, h0.astype(jnp.float32), c0.astype(jnp.float32))
    return h_out, c_out


def lstm_reference(x, w_ih, w_hh, b_ih, b_hh, h0, c0, mxu_dtype=None):
    """Pure-JAX reference matching the PyTorch forward; optionally casts the
    matmul inputs to `mxu_dtype` (f32 accumulation) to mirror kernel numerics."""
    H = h0.shape[-1]
    cast = (lambda a: a) if mxu_dtype is None else (lambda a: a.astype(mxu_dtype))
    h, c = h0, c0
    for t in range(x.shape[0]):
        gates = (
            jnp.dot(cast(x[t]), cast(w_ih.T), preferred_element_type=jnp.float32)
            + b_ih
            + jnp.dot(cast(h), cast(w_hh.T), preferred_element_type=jnp.float32)
            + b_hh)
        i_g = jax.nn.sigmoid(gates[:, 0 * H:1 * H])
        f_g = jax.nn.sigmoid(gates[:, 1 * H:2 * H])
        g_g = jnp.tanh(gates[:, 2 * H:3 * H])
        o_g = jax.nn.sigmoid(gates[:, 3 * H:4 * H])
        c = f_g * c + i_g * g_g
        h = o_g * jnp.tanh(c)
    return h, c


if __name__ == "__main__":
    # Small shapes consistent with the module's forward.
    seq_len, batch, input_size, hidden_size = 10, 8, 16, 32

    key = jax.random.PRNGKey(0)
    k_x, k_h, k_c, k_wih, k_whh, k_bih, k_bhh = jax.random.split(key, 7)

    # Deterministic init: uniform(-1/sqrt(H), 1/sqrt(H)) like reset_parameters.
    std = 1.0 / math.sqrt(hidden_size)
    w_ih = jax.random.uniform(k_wih, (4 * hidden_size, input_size),
                              minval=-std, maxval=std, dtype=jnp.float32)
    w_hh = jax.random.uniform(k_whh, (4 * hidden_size, hidden_size),
                              minval=-std, maxval=std, dtype=jnp.float32)
    b_ih = jax.random.uniform(k_bih, (4 * hidden_size,),
                              minval=-std, maxval=std, dtype=jnp.float32)
    b_hh = jax.random.uniform(k_bhh, (4 * hidden_size,),
                              minval=-std, maxval=std, dtype=jnp.float32)

    x = jax.random.normal(k_x, (seq_len, batch, input_size), dtype=jnp.float32)
    h0 = jax.random.normal(k_h, (batch, hidden_size), dtype=jnp.float32)
    c0 = jax.random.normal(k_c, (batch, hidden_size), dtype=jnp.float32)

    # chunk=4 exercises multi-chunk carry + padded-tail masking (T_pad=12 > 10).
    h_out, c_out = lstm_forward(x, w_ih, w_hh, b_ih, b_hh, h0, c0, chunk=4)
    jax.block_until_ready((h_out, c_out))

    # Tight check vs. a reference with matching numerics (bf16 MXU inputs).
    h_ref, c_ref = lstm_reference(x, w_ih, w_hh, b_ih, b_hh, h0, c0,
                                  mxu_dtype=jnp.bfloat16)
    assert jnp.allclose(h_out, h_ref, atol=1e-3, rtol=1e-3)
    assert jnp.allclose(c_out, c_ref, atol=1e-3, rtol=1e-3)

    # Sanity check vs. the exact f32 PyTorch-equivalent reference.
    h_f32, c_f32 = lstm_reference(x, w_ih, w_hh, b_ih, b_hh, h0, c0)
    assert jnp.allclose(h_out, h_f32, atol=5e-2, rtol=5e-2)
    assert jnp.allclose(c_out, c_f32, atol=5e-2, rtol=5e-2)

    print("KERNEL_OK")
</pallas_src>

<mosaic_0001>
module attributes {stable_mosaic.version = 11 : i64} {
  func.func @input_proj_kernel(%arg0: i32, %arg1: memref<32x16xbf16, #tpu.memory_space<vmem>>, %arg2: memref<16x128xbf16, #tpu.memory_space<vmem>>, %arg3: memref<1x128xf32, #tpu.memory_space<vmem>>, %arg4: memref<32x128xf32, #tpu.memory_space<vmem>>) attributes {dimension_semantics = [#tpu.dimension_semantics<parallel>], iteration_bounds = array<i64: 3>, scalar_prefetch = 0 : i64, scratch_operands = 0 : i64, tpu.core_type = #tpu.core_type<tc>, window_params = [{transform_indices = @transform_0, window_bounds = array<i64: 32, 16>}, {pipeline_mode = #tpu.pipeline_mode<synchronous>, transform_indices = @transform_1, window_bounds = array<i64: 16, 128>}, {pipeline_mode = #tpu.pipeline_mode<synchronous>, transform_indices = @transform_2, window_bounds = array<i64: 1, 128>}, {transform_indices = @transform_3, window_bounds = array<i64: 32, 128>}]} {
    %c0 = arith.constant 0 : index
    %c0_0 = arith.constant 0 : index
    %0 = vector.load %arg1[%c0, %c0_0] : memref<32x16xbf16, #tpu.memory_space<vmem>>, vector<32x16xbf16>
    %c0_1 = arith.constant 0 : index
    %c0_2 = arith.constant 0 : index
    %1 = vector.load %arg2[%c0_1, %c0_2] : memref<16x128xbf16, #tpu.memory_space<vmem>>, vector<16x128xbf16>
    %cst = arith.constant dense<0.000000e+00> : vector<32x128xf32>
    %2 = tpu.matmul %0, %1, %cst {dimension_numbers = #tpu.dot_dimension_numbers<[1], [0], [0], [1], [0, 0, 1, 1], [], []>} : vector<32x16xbf16>, vector<16x128xbf16>, vector<32x128xf32> -> vector<32x128xf32>
    %c0_3 = arith.constant 0 : index
    %c0_4 = arith.constant 0 : index
    %3 = vector.load %arg3[%c0_3, %c0_4] : memref<1x128xf32, #tpu.memory_space<vmem>>, vector<1x128xf32>
    %4 = vector.broadcast %3 : vector<1x128xf32> to vector<32x128xf32>
    %5 = arith.addf %2, %4 : vector<32x128xf32>
    %c0_5 = arith.constant 0 : index
    %c0_6 = arith.constant 0 : index
    %6 = vector.load %arg4[%c0_5, %c0_6] : memref<32x128xf32, #tpu.memory_space<vmem>>, vector<32x128xf32>
    tpu.vector_store %arg4[%c0_5, %c0_6], %5 {strides = array<i32>} : memref<32x128xf32, #tpu.memory_space<vmem>>, vector<32x128xf32>,
    return
  }
  func.func @transform_0(%arg0: i32) -> (i32, i32) {
    %c0_i32 = arith.constant 0 : i32
    %c0_i32_0 = arith.constant 0 : i32
    return %arg0, %c0_i32 : i32, i32
  }
  func.func @transform_1(%arg0: i32) -> (i32, i32) {
    %c0_i32 = arith.constant 0 : i32
    %c0_i32_0 = arith.constant 0 : i32
    %c0_i32_1 = arith.constant 0 : i32
    return %c0_i32, %c0_i32_0 : i32, i32
  }
  func.func @transform_2(%arg0: i32) -> (i32, i32) {
    %c0_i32 = arith.constant 0 : i32
    %c0_i32_0 = arith.constant 0 : i32
    %c0_i32_1 = arith.constant 0 : i32
    return %c0_i32, %c0_i32_0 : i32, i32
  }
  func.func @transform_3(%arg0: i32) -> (i32, i32) {
    %c0_i32 = arith.constant 0 : i32
    %c0_i32_0 = arith.constant 0 : i32
    return %arg0, %c0_i32 : i32, i32
  }
}

</mosaic_0001>

<bundles_post_ra>
// kernel: tpu_custom_call.1
= control target key start
LH: loop header
LB: loop body
LE: loop exit
PB: predicated region body
PF: predicated region fallthrough
CT: control target
= control target key end

     0   :  { %8 = vsyncpa [#allocation3], 0  ;;  %s556_s0 = inlined_call_operand.vmem [shape: bf16[96,16], index: 0, kind: input, shape index: {}]   ;;  %s557_s1 = inlined_call_operand.vmem [shape: bf16[16,128], index: 1, kind: input, shape index: {}]   ;;  %s558_s2 = inlined_call_operand.vmem [shape: f32[1,128], index: 2, kind: input, shape index: {}]   ;;  %s559_s3 = inlined_call_operand.hbm [shape: f32[96,128], index: 3, kind: output, shape index: {}]  }
   0x1   :  { %10 = vsyncpa [#allocation3 + $0x1], 0  ;;  %s466_s12 = smov 0   ;;  %s468_s13 = smov 0  }
   0x2   :  { %s470_s14 = smov 0   ;;  %s472_s15 = smov 0  }
   0x3 LB: > { %s487_s16 = sadd.s32 4294967295, %s442_s15   ;;  %s307_s17 = sadd.s32 4294967294, %s442_s15   ;;  %s442_s15 = sphi %s472_s15, %s565_s15   ;;  %s438_s14 = sphi %s470_s14, %s564_s14   ;;  %s434_s13 = sphi %s468_s13, %s563_s13   ;;  %s430_s12 = sphi %s466_s12, %s562_s12  }
   0x4   : > { %s491_s18 = sadd.s32 1, %s442_s15   ;;  %s91_s19 = sadd.s32 1, %s438_s14 }
   0x5   : > { %s88_s20 = ssub.s32 %s442_s15, %s491_s18  ;;  %p101_p0 = scmp.ne.s32.totalorder %s438_s14, %s434_s13 }
   0x6   : > { %p89_p1 = scmp.eq.s32.totalorder %s88_s20, 0  ;;  %p102_p2 = scmp.eq.s32.totalorder %s487_s16, 2 }
   0x7   : > { %p107_p3 = scmp.ne.s32.totalorder %s434_s13, %s430_s12  ;;  %p108_p4 = scmp.eq.s32.totalorder %s307_s17, 2 }
   0x8   : > { %s502_s21 = scalar_select %p89_p1, %s438_s14, %s91_s19  }
   0x9   : > { %p504_p5 = por %p102_p2, %p101_p0  ;;  %p508_p6 = por %p108_p4, %p107_p3 }
   0xa   : > { %p310_p7 = scmp.ge.s32.totalorder %s442_s15, 1  ;;  %p141_p8 = scmp.lt.s32.totalorder %s442_s15, 4 }
   0xc   : > { %p142_p9 = pnand %p310_p7, %p141_p8 }
   0xd   : > { %s312_s26 = sshll.u32 (!%p142_p9), %s487_s16, 2  ;;  %s162_s4 = sand.u32 (!%p142_p9), 1, %s434_s13  }
   0xe   : > { %145 = sbr.rel (%p142_p9) target bundleno = 164 (0xa4), region = 32  ;;  %p166_p10 = scmp.lt.s32.totalorder (!%p142_p9), %s312_s26, 11 }
   0xf   : > { %s311_s5 = sshll.u32 (!%p142_p9), %s162_s4, 5  ;;  %s336_s8 = sshll.u32 (!%p142_p9), %s487_s16, 5 }
  0x10   : > { %s164_s9 = scalar_lea.vmem (!%p142_p9), [#allocation2], %s311_s5  ;;  %s241_s17 = scalar_lea.hbm (!%p142_p9), %s559_s3, %s336_s8 }
  0x11   : > { %s242_s19 = sshll.u32 (!%p142_p9), %s164_s9, 4  ;;  %s244_s20 = sshll.u32 (!%p142_p9), %s241_s17, 4  ;;  %s243_s19 = int_to_ptr.vmem [resolvable:$true] %s242_s19  ;;  %s245_s20 = int_to_ptr.hbm [resolvable:$true] %s244_s20 }
  0x12   : > { %s230_s16 = scalar_lea.sflag (!%p142_p9), [#allocation3], %s162_s4  ;;  %s394_s24 = sshra.s32 (!%p142_p9), %s245_s20, 4  ;;  %s395_s24 = int_to_ptr.hbm [resolvable:$true] %s394_s24 }
  0x13   : > { %v335_v0 = vld [vmem:[%s557_s1] sm:$0xff]  ;;  %s567_s26 = smov (!%p166_p10, %s312_s26), 11  ;;  %vm199_vm0 = vcmask 130048   ;;  %s396_s25 = scalar_lea.hbm %s395_s24, 32 }
  0x14   : > { %213 = vmatpush.bf16.msra.mxu0 %v335_v0  ;;  %337 = vmatpush.bf16.msra.mxu1 %v335_v0  ;;  %s313_s27 = sshll.u32 %s567_s26, 2  ;;  %v379_v3 = vld [vmem:[%s558_s2] ss:$0 sm:$0xff]  ;;  %p397_p11 = scmp.ne.s32.totalorder %s395_s24, %s396_s25 }
  0x15   : > { %s169_s30 = scalar_lea.vmem %s556_s0, %s313_s27  ;;  %s400_s28 = scalar_lea.hbm %s559_s3, 96 }
  0x16   : > { %v333_v1 = vld [vmem:[%s169_s30] sm:$0xff]  ;;  %v334_v2 = vld [vmem:[%s169_s30 + $0x8] sm:$0xff]  ;;  %p398_p12 = pnand %p397_p11, %p504_p5  ;;  %p401_p0 = scmp.lt.s32.totalorder %s395_s24, %s559_s3 }
  0x17   : > { %326 = vmatmul.msk.bf16.vlgmr.msra.gmra.mxu0 %vm199_vm0, %v333_v1  ;;  %327 = vmatmul.msk.bf16.vlgmr.msra.gmra.mxu1 %vm199_vm0, %v334_v2  ;;  %p402_p1 = scmp.lt.s32.totalorder %s400_s28, %s396_s25 }
  0x18   : > { %p399_p13 = pneg %p398_p12 }
  0x19   : > { %p403_p2 = por %p402_p1, %p401_p0 }
  0x1b   : > { %p404_p3 = pnand %p403_p2, %p399_p13 }
  0x94   : > { %v215_v4 = vpop.f32.mrf.mxu0  ;;  %v220_v5 = vpop.f32.mrf.mxu1 }
  0x95   : > { %v216_v6 = vadd.f32 %v379_v3, %v215_v4  ;;  %v221_v7 = vadd.f32 %v379_v3, %v220_v5 }
  0x97   : > { %225 = vst [vmem:[%s164_s9] sm:$0xff] %v216_v6 }
  0x98   : > { %227 = vst [vmem:[%s164_s9 + $0x10] sm:$0xff] %v221_v7 }
  0x9c   : > { %v217_v8 = vpop.f32.mrf.mxu0  ;;  %v222_v9 = vpop.f32.mrf.mxu1 }
  0x9d   : > { %v218_v10 = vadd.f32 %v379_v3, %v217_v8  ;;  %v223_v11 = vadd.f32 %v379_v3, %v222_v9 }
  0x9f   : > { %226 = vst [vmem:[%s164_s9 + $0x8] sm:$0xff] %v218_v10 }
  0xa0   : > { %228 = vst [vmem:[%s164_s9 + $0x18] sm:$0xff] %v223_v11 }
  0xa1   : > { %407 = shalt.err (!%p404_p3)
}
  0xa2   : > { %s444_s4 = smov 128   ;;  %s445_s5 = smov 8  }
  0xa3   : > { %338 = dma.vmem_to_hbm [thread:$0]  (%p504_p5), %s243_s19, 512, %s245_s20, %s230_s16, %s444_s4, %s444_s4, %s445_s5  }
  0xa4 PF: > { %p344_p4 = scmp.ge.s32.totalorder %s442_s15, 2  ;;  %s259_s6 = sand.u32 1, %s430_s12  }
  0xa5   : > { %s260_s7 = scalar_lea.sflag [#allocation3], %s259_s6 }
  0xa6   : > { %p341_p7 = pnand %p344_p4, %p508_p6 }
  0xa8   : > { %p342_p8 = pneg %p341_p7 }
  0xaa   : > { %425 = dma.done.wait (%p342_p8), %s260_s7, 512  }
  0xab   : > { %427 = vsyncadd (%p342_p8), %s260_s7, 4294966784  ;;  %p13_p9 = scmp.ge.s32.totalorder %s491_s18, 5   ;;  %s562_s12 = smov %s434_s13 }
  0xac   : > { %s563_s13 = smov %s438_s14  ;;  %s564_s14 = smov %s502_s21 }
  0xad   : > { %s565_s15 = smov %s491_s18  ;;  %15 = sbr.rel (!%p13_p9) target bundleno = 3 (0x3), region = 67 }
  0xb2   :  { %266 = vsyncpa [#allocation3], 1 }
  0xb3   :  { %268 = vsyncpa [#allocation3 + $0x1], 1 }

</bundles_post_ra>
